<compile_context>
chip_gen: v7x
topology: tpu7x:2x2x1
jax: 0.10.0
libtpu: 0.0.40
codegen_flags: <defaults>
</compile_context>

<pallas_src>
import jax
import jax.numpy as jnp
from jax.experimental import pallas as pl
from jax.experimental.pallas import tpu as pltpu

BATCH_SIZE = 128          # hardcoded in the PyTorch module (x.view(batch_size, -1))
IN_FEATURES = 784         # 1 * 28 * 28
HIDDEN_SIZE = 50          # logical hidden size
HP = 128                  # lane-dense padded hidden size (one vreg of lanes)
LOGVAR_OFF = 64           # lane offset of the logvar head inside the packed weight


def encoder_kernel(x_ref, w_ref, b_ref, eps_ref, mu_ref, logvar_ref, reparam_ref):
    """Fused: one 128-lane MXU pass for both heads + bias + ReLU + reparam.

    x_ref:       (B, 784)  f32   (cast to bf16 in-kernel, right before the dot)
    w_ref:       (784, 128) bf16  [W1 in lanes 0:50 | zeros | W2 in lanes 64:114 | zeros]
    b_ref:       (1, 128)  f32   packed the same way
    eps_ref:     (B, 128)  f32   standard-normal noise (lane-dense; lanes >=50 unused)
    outputs:     mu, logvar, reparam all (B, 128) f32; logical values in lanes 0:50
    """
    x_bf = x_ref[...].astype(jnp.bfloat16)                 # cast hides under MXU/DMA
    h = jnp.dot(x_bf, w_ref[...], preferred_element_type=jnp.float32)
    h = jnp.maximum(h + b_ref[...], 0.0)                   # bias + ReLU (f32, VPU)

    # mu head already sits in lanes 0:50.  Bring the logvar head (lanes 64:114)
    # to lane 0 with a single XLU lane rotation (free slot, no masked stores).
    mu = h
    logvar = pltpu.roll(h, shift=LOGVAR_OFF, axis=1)

    std = jnp.exp(0.5 * logvar)                            # logvar.mul(0.5).exp_()  (EUP)
    reparam = eps_ref[...] * std + mu                      # eps.mul(std).add_(mu)

    mu_ref[...] = mu
    logvar_ref[...] = logvar
    reparam_ref[...] = reparam


def pack_params(w1, b1, w2, b2):
    """One-time packing: both heads into a single 128-lane bf16 weight + f32 bias.

    Call this ONCE at init; pass the results into encoder_forward every step.
    """
    wc = jnp.zeros((IN_FEATURES, HP), jnp.float32)
    wc = wc.at[:, :HIDDEN_SIZE].set(w1)
    wc = wc.at[:, LOGVAR_OFF:LOGVAR_OFF + HIDDEN_SIZE].set(w2)
    bc = jnp.zeros((1, HP), jnp.float32)
    bc = bc.at[0, :HIDDEN_SIZE].set(b1)
    bc = bc.at[0, LOGVAR_OFF:LOGVAR_OFF + HIDDEN_SIZE].set(b2)
    return wc.astype(jnp.bfloat16), bc


@jax.jit
def encoder_forward(x_nchw, w_packed, b_packed, eps):
    """x_nchw: (B, 1, 28, 28) f32; eps: (B, 128) f32 standard normal.

    Returns (mu, logvar, reparam), each (B, 50) f32.
    """
    B = x_nchw.shape[0]
    x2d = x_nchw.reshape(B, -1)                  # x.view(batch_size, -1); free reshape, stays f32

    out_sds = jax.ShapeDtypeStruct((B, HP), jnp.float32)
    vmem_spec = pl.BlockSpec(memory_space=pltpu.MemorySpace.VMEM)

    cost = pl.CostEstimate(
        flops=2 * B * IN_FEATURES * HP,
        transcendentals=B * HP,
        bytes_accessed=(B * IN_FEATURES * 4          # x   (f32)
                        + IN_FEATURES * HP * 2       # W   (bf16, packed)
                        + HP * 4                     # b
                        + B * HP * 4                 # eps
                        + 3 * B * HP * 4),           # outputs
    )

    mu_p, logvar_p, reparam_p = pl.pallas_call(
        encoder_kernel,
        out_shape=(out_sds, out_sds, out_sds),
        in_specs=[vmem_spec] * 4,
        out_specs=(vmem_spec, vmem_spec, vmem_spec),
        cost_estimate=cost,
    )(x2d, w_packed, b_packed, eps)

    # Slice padded lanes back to the logical hidden size.
    return (mu_p[:, :HIDDEN_SIZE],
            logvar_p[:, :HIDDEN_SIZE],
            reparam_p[:, :HIDDEN_SIZE])


def init_params(key):
    """Deterministic synthetic parameters (PyTorch-Linear-like uniform init)."""
    k1, k2, k3, k4 = jax.random.split(key, 4)
    bound = 1.0 / jnp.sqrt(IN_FEATURES)
    # Stored as (in, out) — the transpose of PyTorch's (out, in) weight.
    w1 = jax.random.uniform(k1, (IN_FEATURES, HIDDEN_SIZE), jnp.float32, -bound, bound)
    b1 = jax.random.uniform(k2, (HIDDEN_SIZE,), jnp.float32, -bound, bound)
    w2 = jax.random.uniform(k3, (IN_FEATURES, HIDDEN_SIZE), jnp.float32, -bound, bound)
    b2 = jax.random.uniform(k4, (HIDDEN_SIZE,), jnp.float32, -bound, bound)
    return w1, b1, w2, b2


if __name__ == "__main__":
    key = jax.random.PRNGKey(0)
    k_x, k_eps, k_params = jax.random.split(key, 3)

    # MNIST-like NCHW input: (128, 1, 28, 28).  batch_size=128 and in=784 are
    # hardcoded by the PyTorch module (x.view(batch_size, -1), Linear(784, 50)).
    x = jax.random.normal(k_x, (BATCH_SIZE, 1, 28, 28), jnp.float32)
    # Deterministic standard-normal noise for the reparametrization trick
    # (replaces torch.FloatTensor(...).normal_()).  Generated directly at the
    # lane-dense padded shape so the forward pass needs no per-call padding.
    eps = jax.random.normal(k_eps, (BATCH_SIZE, HP), jnp.float32)

    w1, b1, w2, b2 = init_params(k_params)
    # Pack weights/bias ONCE; reuse across every forward call.
    w_packed, b_packed = pack_params(w1, b1, w2, b2)

    mu, logvar, reparam = encoder_forward(x, w_packed, b_packed, eps)
    jax.block_until_ready((mu, logvar, reparam))

    # Pure-JAX reference with the same bf16-input / f32-accumulate matmul.
    x2d = x.reshape(BATCH_SIZE, -1).astype(jnp.bfloat16)
    w1b = w1.astype(jnp.bfloat16)
    w2b = w2.astype(jnp.bfloat16)
    mu_ref = jnp.maximum(
        jnp.dot(x2d, w1b, preferred_element_type=jnp.float32) + b1, 0.0)
    lv_ref = jnp.maximum(
        jnp.dot(x2d, w2b, preferred_element_type=jnp.float32) + b2, 0.0)
    rp_ref = eps[:, :HIDDEN_SIZE] * jnp.exp(0.5 * lv_ref) + mu_ref

    assert mu.shape == (BATCH_SIZE, HIDDEN_SIZE)
    assert logvar.shape == (BATCH_SIZE, HIDDEN_SIZE)
    assert reparam.shape == (BATCH_SIZE, HIDDEN_SIZE)
    assert jnp.allclose(mu, mu_ref, atol=1e-3, rtol=1e-3)
    assert jnp.allclose(logvar, lv_ref, atol=1e-3, rtol=1e-3)
    assert jnp.allclose(reparam, rp_ref, atol=1e-3, rtol=1e-3)

    # Sanity: bf16-input result stays close to the full-f32 math
    # (intentional precision choice: bf16 x/W on the MXU, f32 accumulation).
    x2d_f = x.reshape(BATCH_SIZE, -1)
    mu_f32 = jnp.maximum(x2d_f @ w1 + b1, 0.0)
    assert jnp.allclose(mu, mu_f32, atol=5e-2)

    print("KERNEL_OK")
</pallas_src>

<mosaic_0001>
module attributes {stable_mosaic.version = 11 : i64} {
  func.func @encoder_kernel(%arg0: memref<128x784xf32, #tpu.memory_space<vmem>>, %arg1: memref<784x128xbf16, #tpu.memory_space<vmem>>, %arg2: memref<1x128xf32, #tpu.memory_space<vmem>>, %arg3: memref<128x128xf32, #tpu.memory_space<vmem>>, %arg4: memref<128x128xf32, #tpu.memory_space<vmem>>, %arg5: memref<128x128xf32, #tpu.memory_space<vmem>>, %arg6: memref<128x128xf32, #tpu.memory_space<vmem>>) attributes {dimension_semantics = [], scalar_prefetch = 0 : i64, scratch_operands = 0 : i64, tpu.core_type = #tpu.core_type<tc>} {
    %c0 = arith.constant 0 : index
    %c0_0 = arith.constant 0 : index
    %0 = vector.load %arg0[%c0, %c0_0] : memref<128x784xf32, #tpu.memory_space<vmem>>, vector<128x784xf32>
    %1 = arith.truncf %0 : vector<128x784xf32> to vector<128x784xbf16>
    %c0_1 = arith.constant 0 : index
    %c0_2 = arith.constant 0 : index
    %2 = vector.load %arg1[%c0_1, %c0_2] : memref<784x128xbf16, #tpu.memory_space<vmem>>, vector<784x128xbf16>
    %cst = arith.constant dense<0.000000e+00> : vector<128x128xf32>
    %3 = tpu.matmul %1, %2, %cst {dimension_numbers = #tpu.dot_dimension_numbers<[1], [0], [0], [1], [0, 0, 1, 1], [], []>} : vector<128x784xbf16>, vector<784x128xbf16>, vector<128x128xf32> -> vector<128x128xf32>
    %c0_3 = arith.constant 0 : index
    %c0_4 = arith.constant 0 : index
    %4 = vector.load %arg2[%c0_3, %c0_4] : memref<1x128xf32, #tpu.memory_space<vmem>>, vector<1x128xf32>
    %5 = vector.broadcast %4 : vector<1x128xf32> to vector<128x128xf32>
    %6 = arith.addf %3, %5 : vector<128x128xf32>
    %cst_5 = arith.constant 0.000000e+00 : f32
    %7 = vector.broadcast %cst_5 : f32 to vector<128x128xf32>
    %8 = arith.maximumf %6, %7 : vector<128x128xf32>
    %c64_i32 = arith.constant 64 : i32
    %9 = tpu.dynamic_rotate %8 by %c64_i32 dim 1 : vector<128x128xf32>, i32 -> vector<128x128xf32>
    %cst_6 = arith.constant 5.000000e-01 : f32
    %10 = vector.broadcast %cst_6 : f32 to vector<128x128xf32>
    %11 = arith.mulf %10, %9 : vector<128x128xf32>
    %12 = math.exp %11 : vector<128x128xf32>
    %c0_7 = arith.constant 0 : index
    %c0_8 = arith.constant 0 : index
    %13 = vector.load %arg3[%c0_7, %c0_8] : memref<128x128xf32, #tpu.memory_space<vmem>>, vector<128x128xf32>
    %14 = arith.mulf %13, %12 : vector<128x128xf32>
    %15 = arith.addf %14, %8 : vector<128x128xf32>
    %c0_9 = arith.constant 0 : index
    %c0_10 = arith.constant 0 : index
    %16 = vector.load %arg4[%c0_9, %c0_10] : memref<128x128xf32, #tpu.memory_space<vmem>>, vector<128x128xf32>
    tpu.vector_store %arg4[%c0_9, %c0_10], %8 {strides = array<i32>} : memref<128x128xf32, #tpu.memory_space<vmem>>, vector<128x128xf32>,
    %c0_11 = arith.constant 0 : index
    %c0_12 = arith.constant 0 : index
    %17 = vector.load %arg5[%c0_11, %c0_12] : memref<128x128xf32, #tpu.memory_space<vmem>>, vector<128x128xf32>
    tpu.vector_store %arg5[%c0_11, %c0_12], %9 {strides = array<i32>} : memref<128x128xf32, #tpu.memory_space<vmem>>, vector<128x128xf32>,
    %c0_13 = arith.constant 0 : index
    %c0_14 = arith.constant 0 : index
    %18 = vector.load %arg6[%c0_13, %c0_14] : memref<128x128xf32, #tpu.memory_space<vmem>>, vector<128x128xf32>
    tpu.vector_store %arg6[%c0_13, %c0_14], %15 {strides = array<i32>} : memref<128x128xf32, #tpu.memory_space<vmem>>, vector<128x128xf32>,
    return
  }
}

</mosaic_0001>

<bundles_post_ra>
// kernel: encoder_forward.1
= control target key start
LH: loop header
LB: loop body
LE: loop exit
PB: predicated region body
PF: predicated region fallthrough
CT: control target
= control target key end

     0   :  { %vm588_vm0 = vcmask 130048   ;;  %s1580_s28 = smov 64   ;;  %s2464_s1 = inlined_call_operand.vmem [shape: bf16[784,128], index: 1, kind: input, shape index: {}]   ;;  %s2465_s0 = inlined_call_operand.vmem [shape: f32[128,784], index: 0, kind: input, shape index: {}]   ;;  %s2466_s2 = inlined_call_operand.vmem [shape: f32[1,128], index: 2, kind: input, shape index: {}]   ;;  %s2467_s4 = inlined_call_operand.vmem [shape: f32[128,128], index: 4, kind: output, shape index: {0}]   ;;  %s2468_s5 = inlined_call_operand.vmem [shape: f32[128,128], index: 5, kind: output, shape index: {1}]   ;;  %s2469_s3 = inlined_call_operand.vmem [shape: f32[128,128], index: 3, kind: input, shape index: {}]   ;;  %s2470_s6 = inlined_call_operand.vmem [shape: f32[128,128], index: 6, kind: output, shape index: {2}]  }
   0x1   :  { %v1499_v0 = vld [vmem:[%s2464_s1 + $0x40] sm:$0xff]   ;;  %v1503_v4 = vld [vmem:[%s2464_s1 + $0x48] sm:$0xff]   ;;  %v1507_v8 = vld [vmem:[%s2464_s1 + $0x50] sm:$0xff]  }
   0x2   :  { %v1500_v1 = vld [vmem:[%s2464_s1 + $0xc0] sm:$0xff]   ;;  %1263 = vmatprep.subr.bf16.mxu0 %v1499_v0  ;;  %v1504_v5 = vld [vmem:[%s2464_s1 + $0xc8] sm:$0xff]   ;;  %v1508_v9 = vld [vmem:[%s2464_s1 + $0xd0] sm:$0xff]  }
   0x3   :  { %v1501_v2 = vld [vmem:[%s2464_s1] sm:$0xff]   ;;  %1327 = vmatprep.subr.bf16.mxu1 %v1500_v1  ;;  %v1505_v6 = vld [vmem:[%s2464_s1 + $0x8] sm:$0xff]   ;;  %v1509_v10 = vld [vmem:[%s2464_s1 + $0x10] sm:$0xff]  }
   0x4   :  { %v1502_v3 = vld [vmem:[%s2464_s1 + $0x80] sm:$0xff]   ;;  %1264 = vmatpush3.bf16.msra.mxu0 %v1501_v2  ;;  %v1506_v7 = vld [vmem:[%s2464_s1 + $0x88] sm:$0xff]   ;;  %v1510_v11 = vld [vmem:[%s2464_s1 + $0x90] sm:$0xff]  }
   0x5   :  { %1328 = vmatpush3.bf16.msra.mxu1 %v1502_v3  ;;  %1265 = vmatprep.subr.bf16.mxu0 %v1503_v4  ;;  %v1511_v12 = vld [vmem:[%s2464_s1 + $0x58] sm:$0xff]   ;;  %v1515_v16 = vld [vmem:[%s2464_s1 + $0x60] sm:$0xff]   ;;  %v1519_v20 = vld [vmem:[%s2464_s1 + $0x68] sm:$0xff]  }
   0x6   :  { %1329 = vmatprep.subr.bf16.mxu1 %v1504_v5  ;;  %v1512_v13 = vld [vmem:[%s2464_s1 + $0xd8] sm:$0xff]   ;;  %v1516_v17 = vld [vmem:[%s2464_s1 + $0xe0] sm:$0xff]   ;;  %v1520_v21 = vld [vmem:[%s2464_s1 + $0xe8] sm:$0xff]  }
   0x7   :  { %v1513_v14 = vld [vmem:[%s2464_s1 + $0x18] sm:$0xff]   ;;  %v1517_v18 = vld [vmem:[%s2464_s1 + $0x20] sm:$0xff]   ;;  %v1521_v22 = vld [vmem:[%s2464_s1 + $0x28] sm:$0xff]  }
   0x8   :  { %1266 = vmatpush3.bf16.msra.mxu0 %v1505_v6  ;;  %v1514_v15 = vld [vmem:[%s2464_s1 + $0x98] sm:$0xff]   ;;  %v1518_v19 = vld [vmem:[%s2464_s1 + $0xa0] sm:$0xff]   ;;  %v1522_v23 = vld [vmem:[%s2464_s1 + $0xa8] sm:$0xff]  }
   0x9   :  { %1330 = vmatpush3.bf16.msra.mxu1 %v1506_v7  ;;  %1267 = vmatprep.subr.bf16.mxu0 %v1507_v8  ;;  %v1523_v24 = vld [vmem:[%s2464_s1 + $0x70] sm:$0xff]   ;;  %v1527_v28 = vld [vmem:[%s2464_s1 + $0x78] sm:$0xff]   ;;  %v22_v32 = vld [vmem:[%s2465_s0 + $0x8] sm:$0xff] }
   0xa   :  { %1331 = vmatprep.subr.bf16.mxu1 %v1508_v9  ;;  %v1524_v25 = vld [vmem:[%s2464_s1 + $0xf0] sm:$0xff]   ;;  %v1528_v29 = vld [vmem:[%s2464_s1 + $0xf8] sm:$0xff]   ;;  %v29_v33 = vld [vmem:[%s2465_s0 + $0x40] sm:$0xff] }
   0xb   :  { %v1525_v26 = vld [vmem:[%s2464_s1 + $0x30] sm:$0xff]   ;;  %v1529_v30 = vld [vmem:[%s2464_s1 + $0x38] sm:$0xff]   ;;  %v134_v35 = vpack.c.bf16 %v29_v33, %v22_v32  ;;  %v21_v37 = vld [vmem:[%s2465_s0] sm:$0xff] }
   0xc   :  { %1268 = vmatpush3.bf16.msra.mxu0 %v1509_v10  ;;  %v1526_v27 = vld [vmem:[%s2464_s1 + $0xb0] sm:$0xff]   ;;  %v1530_v31 = vld [vmem:[%s2464_s1 + $0xb8] sm:$0xff]   ;;  %v30_v42 = vld [vmem:[%s2465_s0 + $0x48] sm:$0xff] }
   0xd   :  { %1332 = vmatpush3.bf16.msra.mxu1 %v1510_v11  ;;  %1269 = vmatprep.subr.bf16.mxu0 %v1511_v12  ;;  %v24_v34 = vld [vmem:[%s2465_s0 + $0x18] sm:$0xff]  ;;  %v31_v36 = vld [vmem:[%s2465_s0 + $0x50] sm:$0xff]  ;;  %v1531_v44 = vld [vmem:[%s2464_s1 + $0x140] sm:$0xff]  }
   0xe   :  { %1333 = vmatprep.subr.bf16.mxu1 %v1512_v13  ;;  %v28_v38 = vld [vmem:[%s2465_s0 + $0x38] sm:$0xff]  ;;  %v136_v39 = vpack.c.bf16 %v31_v36, %v24_v34  ;;  %v23_v41 = vld [vmem:[%s2465_s0 + $0x10] sm:$0xff]  ;;  %645 = vmatprep.mubr.bf16.mxu0 %v134_v35  ;;  %v1532_v45 = vld [vmem:[%s2464_s1 + $0x100] sm:$0xff]  }
   0xf   :  { %v133_v40 = vpack.c.bf16 %v28_v38, %v21_v37  ;;  %v135_v43 = vpack.c.bf16 %v30_v42, %v23_v41  ;;  %v36_v46 = vld [vmem:[%s2465_s0 + $0x78] sm:$0xff]  ;;  %v43_v47 = vld [vmem:[%s2465_s0 + $0xb0] sm:$0xff]  ;;  %v38_v48 = vld [vmem:[%s2465_s0 + $0x88] sm:$0xff] }
  0x10   :  { %1270 = vmatpush3.bf16.msra.mxu0 %v1513_v14  ;;  %742 = vmatprep.mubr.bf16.mxu1 %v136_v39  ;;  %v45_v49 = vld [vmem:[%s2465_s0 + $0xc0] sm:$0xff]  ;;  %v141_v50 = vpack.c.bf16 %v43_v47, %v36_v46  ;;  %v35_v52 = vld [vmem:[%s2465_s0 + $0x70] sm:$0xff]  ;;  %v42_v53 = vld [vmem:[%s2465_s0 + $0xa8] sm:$0xff] }
  0x11   :  { %1334 = vmatpush3.bf16.msra.mxu1 %v1514_v15  ;;  %1271 = vmatprep.subr.bf16.mxu0 %v1515_v16  ;;  %v143_v51 = vpack.c.bf16 %v45_v49, %v38_v48  ;;  %v37_v54 = vld [vmem:[%s2465_s0 + $0x80] sm:$0xff]  ;;  %v44_v55 = vld [vmem:[%s2465_s0 + $0xb8] sm:$0xff]  ;;  %v140_v56 = vpack.c.bf16 %v42_v53, %v35_v52  ;;  %v1533_v57 = vld [vmem:[%s2464_s1 + $0x148] sm:$0xff]  }
  0x12   :  { %1335 = vmatprep.subr.bf16.mxu1 %v1516_v17  ;;  %v142_v58 = vpack.c.bf16 %v44_v55, %v37_v54  ;;  %v1534_v59 = vld [vmem:[%s2464_s1 + $0x108] sm:$0xff]   ;;  %v57_v61 = vld [vmem:[%s2465_s0 + $0x120] sm:$0xff]  ;;  %v52_v63 = vld [vmem:[%s2465_s0 + $0xf8] sm:$0xff] }
  0x13   :  { %v50_v60 = vld [vmem:[%s2465_s0 + $0xe8] sm:$0xff]  ;;  %v59_v0 = vld [vmem:[%s2465_s0 + $0x130] sm:$0xff]  ;;  %v49_v2 = vld [vmem:[%s2465_s0 + $0xe0] sm:$0xff] }
  0x14   :  { %1272 = vmatpush3.bf16.msra.mxu0 %v1517_v18  ;;  %v148_v62 = vpack.c.bf16 %v57_v61, %v50_v60  ;;  %v150_v1 = vpack.c.bf16 %v59_v0, %v52_v63  ;;  %v56_v3 = vld [vmem:[%s2465_s0 + $0x118] sm:$0xff]  ;;  %v51_v4 = vld [vmem:[%s2465_s0 + $0xf0] sm:$0xff]  ;;  %v58_v7 = vld [vmem:[%s2465_s0 + $0x128] sm:$0xff] }
  0x15   :  { %1336 = vmatpush3.bf16.msra.mxu1 %v1518_v19  ;;  %1273 = vmatprep.subr.bf16.mxu0 %v1519_v20  ;;  %v1535_v5 = vld [vmem:[%s2464_s1 + $0x150] sm:$0xff]   ;;  %v64_v8 = vld [vmem:[%s2465_s0 + $0x158] sm:$0xff]  ;;  %v66_v10 = vld [vmem:[%s2465_s0 + $0x168] sm:$0xff]  ;;  %v147_v12 = vpack.c.bf16 %v56_v3, %v49_v2  ;;  %v149_v13 = vpack.c.bf16 %v58_v7, %v51_v4 }
  0x16   :  { %1337 = vmatprep.subr.bf16.mxu1 %v1520_v21  ;;  %v1536_v6 = vld [vmem:[%s2464_s1 + $0x110] sm:$0xff]   ;;  %v73_v11 = vld [vmem:[%s2465_s0 + $0x1a0] sm:$0xff]  ;;  %v1537_v15 = vld [vmem:[%s2464_s1 + $0x158] sm:$0xff]  }
  0x17   :  { %v71_v9 = vld [vmem:[%s2465_s0 + $0x190] sm:$0xff]  ;;  %v157_v16 = vpack.c.bf16 %v73_v11, %v66_v10  ;;  %v1538_v17 = vld [vmem:[%s2464_s1 + $0x118] sm:$0xff]   ;;  %v70_v19 = vld [vmem:[%s2465_s0 + $0x188] sm:$0xff] }
  0x18   :  { %1274 = vmatpush3.bf16.msra.mxu0 %v1521_v22  ;;  %v155_v14 = vpack.c.bf16 %v71_v9, %v64_v8  ;;  %v63_v18 = vld [vmem:[%s2465_s0 + $0x150] sm:$0xff]  ;;  %v65_v20 = vld [vmem:[%s2465_s0 + $0x160] sm:$0xff]  ;;  %v72_v21 = vld [vmem:[%s2465_s0 + $0x198] sm:$0xff] }
  0x19   :  { %1338 = vmatpush3.bf16.msra.mxu1 %v1522_v23  ;;  %1275 = vmatprep.subr.bf16.mxu0 %v1523_v24  ;;  %v78_v22 = vld [vmem:[%s2465_s0 + $0x1c8] sm:$0xff]  ;;  %v85_v23 = vld [vmem:[%s2465_s0 + $0x200] sm:$0xff]  ;;  %v84_v35 = vld [vmem:[%s2465_s0 + $0x1f8] sm:$0xff] }
  0x1a   :  { %1339 = vmatprep.subr.bf16.mxu1 %v1524_v25  ;;  %v1539_v24 = vld [vmem:[%s2464_s1 + $0x160] sm:$0xff]   ;;  %v80_v25 = vld [vmem:[%s2465_s0 + $0x1d8] sm:$0xff]  ;;  %v1541_v32 = vld [vmem:[%s2464_s1 + $0x168] sm:$0xff]  }
  0x1b   :  { %v1542_v33 = vld [vmem:[%s2464_s1 + $0x128] sm:$0xff]   ;;  %v77_v34 = vld [vmem:[%s2465_s0 + $0x1c0] sm:$0xff]  ;;  %v79_v36 = vld [vmem:[%s2465_s0 + $0x1d0] sm:$0xff] }
  0x1c   :  { %1276 = vmatpush3.bf16.msra.mxu0 %v1525_v26  ;;  %v87_v26 = vld [vmem:[%s2465_s0 + $0x210] sm:$0xff]  ;;  %v86_v37 = vld [vmem:[%s2465_s0 + $0x208] sm:$0xff]  ;;  %v92_v38 = vld [vmem:[%s2465_s0 + $0x238] sm:$0xff] }
  0x1d   :  { %1340 = vmatpush3.bf16.msra.mxu1 %v1526_v27  ;;  %1277 = vmatprep.subr.bf16.mxu0 %v1527_v28  ;;  %v1540_v27 = vld [vmem:[%s2464_s1 + $0x120] sm:$0xff]   ;;  %v154_v28 = vpack.c.bf16 %v70_v19, %v63_v18  ;;  %v99_v39 = vld [vmem:[%s2465_s0 + $0x270] sm:$0xff]  ;;  %v1545_v49 = vld [vmem:[%s2464_s1 + $0x178] sm:$0xff]  }
  0x1e   :  { %1341 = vmatprep.subr.bf16.mxu1 %v1528_v29  ;;  %v156_v29 = vpack.c.bf16 %v72_v21, %v65_v20  ;;  %v101_v41 = vld [vmem:[%s2465_s0 + $0x280] sm:$0xff]  ;;  %v1543_v42 = vld [vmem:[%s2464_s1 + $0x170] sm:$0xff]   ;;  %v169_v46 = vpack.c.bf16 %v99_v39, %v92_v38  ;;  %v1546_v52 = vld [vmem:[%s2464_s1 + $0x138] sm:$0xff]  }
  0x1f   :  { %v91_v48 = vld [vmem:[%s2465_s0 + $0x230] sm:$0xff]  ;;  %v100_v53 = vld [vmem:[%s2465_s0 + $0x278] sm:$0xff]  ;;  %v106_v54 = vld [vmem:[%s2465_s0 + $0x2a8] sm:$0xff] }
  0x20   :  { %1278 = vmatpush3.bf16.msra.mxu0 %v1529_v30  ;;  %v162_v30 = vpack.c.bf16 %v85_v23, %v78_v22  ;;  %v113_v55 = vld [vmem:[%s2465_s0 + $0x2e0] sm:$0xff]  ;;  %v112_v0 = vld [vmem:[%s2465_s0 + $0x2d8] sm:$0xff]  ;;  %v114_v2 = vld [vmem:[%s2465_s0 + $0x2e8] sm:$0xff] }
  0x21   :  { %1342 = vmatpush3.bf16.msra.mxu1 %v1530_v31  ;;  %1391 = vmatprep.subr.bf16.mxu0 %v1531_v44  ;;  %v164_v31 = vpack.c.bf16 %v87_v26, %v80_v25  ;;  %v176_v61 = vpack.c.bf16 %v113_v55, %v106_v54  ;;  %v105_v63 = vld [vmem:[%s2465_s0 + $0x2a0] sm:$0xff]  ;;  %v120_v3 = vld [vmem:[%s2465_s0 + $0x318] sm:$0xff]  ;;  %v127_v4 = vld [vmem:[%s2465_s0 + $0x350] sm:$0xff] }
  0x22   :  { %1482 = vmatprep.subr.bf16.mxu1 %v1531_v44  ;;  %v1544_v44 = vld [vmem:[%s2464_s1 + $0x130] sm:$0xff]   ;;  %v175_v7 = vpack.c.bf16 %v112_v0, %v105_v63  ;;  %v183_v9 = vpack.c.bf16 %v127_v4, %v120_v3  ;;  %v117_v18 = vld [vmem:[%s2465_s0 + $0x300] sm:$0xff]  ;;  %v116_v26 = vld [vmem:[%s2465_s0 + $0x2f8] sm:$0xff] }
  0x23   :  { %646 = vmatmul.mubr.bf16.vlgmr.msra.gmra.mrb[0].mxu0 %v133_v40  ;;  %v94_v40 = vld [vmem:[%s2465_s0 + $0x248] sm:$0xff]  ;;  %v119_v11 = vld [vmem:[%s2465_s0 + $0x310] sm:$0xff]  ;;  %v25_v23 = vld [vmem:[%s2465_s0 + $0x20] sm:$0xff] }
  0x24   :  { %743 = vmatmul.mubr.bf16.vlgmr.msra.gmra.mrb[0].mxu1 %v135_v43  ;;  %1392 = vmatpush3.bf16.msra.mxu0 %v1532_v45  ;;  %v161_v43 = vpack.c.bf16 %v84_v35, %v77_v34  ;;  %v171_v47 = vpack.c.bf16 %v101_v41, %v94_v40  ;;  %v109_v25 = vld [vmem:[%s2465_s0 + $0x2c0] sm:$0xff]  ;;  %v39_v35 = vld [vmem:[%s2465_s0 + $0x90] sm:$0xff]  ;;  %v130_v38 = vld [vmem:[%s2465_s0 + $0x368] sm:$0xff] }
  0x25   :  { %1490 = vmatpush3.bf16.msra.mxu1 %v1532_v45  ;;  %653 = vmatprep.mubr.bf16.mxu0 %v141_v50  ;;  %v163_v45 = vpack.c.bf16 %v86_v37, %v79_v36  ;;  %v98_v50 = vld [vmem:[%s2465_s0 + $0x268] sm:$0xff]  ;;  %v123_v37 = vld [vmem:[%s2465_s0 + $0x330] sm:$0xff]  ;;  %v61_v40 = vld [vmem:[%s2465_s0 + $0x140] sm:$0xff] }
  0x26   :  { %750 = vmatprep.mubr.bf16.mxu1 %v143_v51  ;;  %1393 = vmatprep.subr.bf16.mxu0 %v1533_v57  ;;  %v93_v51 = vld [vmem:[%s2465_s0 + $0x240] sm:$0xff]  ;;  %v46_v36 = vld [vmem:[%s2465_s0 + $0xc8] sm:$0xff]  ;;  %v27_v41 = vld [vmem:[%s2465_s0 + $0x30] sm:$0xff] }
  0x27   :  { %1483 = vmatprep.subr.bf16.mxu1 %v1533_v57  ;;  %v115_v57 = vld [vmem:[%s2465_s0 + $0x2f0] sm:$0xff]  ;;  %v170_v60 = vpack.c.bf16 %v100_v53, %v93_v51  ;;  %v54_v39 = vld [vmem:[%s2465_s0 + $0x108] sm:$0xff]  ;;  %v68_v51 = vld [vmem:[%s2465_s0 + $0x178] sm:$0xff] }
  0x28   :  { %1394 = vmatpush3.bf16.msra.mxu0 %v1534_v59  ;;  %v55_v53 = vld [vmem:[%s2465_s0 + $0x110] sm:$0xff]  ;;  %v62_v54 = vld [vmem:[%s2465_s0 + $0x148] sm:$0xff]  ;;  %v89_v0 = vld [vmem:[%s2465_s0 + $0x220] sm:$0xff] }
  0x29   :  { %1491 = vmatpush3.bf16.msra.mxu1 %v1534_v59  ;;  %1395 = vmatprep.subr.bf16.mxu0 %v1535_v5  ;;  %v1547_v59 = vld [vmem:[%s2464_s1 + $0x180] sm:$0xff]   ;;  %v82_v63 = vld [vmem:[%s2465_s0 + $0x1e8] sm:$0xff] }
  0x2a   :  { %1484 = vmatprep.subr.bf16.mxu1 %v1535_v5  ;;  %v122_v5 = vld [vmem:[%s2465_s0 + $0x328] sm:$0xff] }
  0x2b   :  { %654 = vmatmul.mubr.bf16.gmra.mrb[4].mxu0 %v140_v56  ;;  %v108_v56 = vld [vmem:[%s2465_s0 + $0x2b8] sm:$0xff] }
  0x2c   :  { %751 = vmatmul.mubr.bf16.gmra.mrb[4].mxu1 %v142_v58  ;;  %661 = vmatprep.mubr.bf16.mxu0 %v148_v62  ;;  %v168_v58 = vpack.c.bf16 %v98_v50, %v91_v48  ;;  %v178_v62 = vpack.c.bf16 %v115_v57, %v108_v56  ;;  %v60_v48 = vld [vmem:[%s2465_s0 + $0x138] sm:$0xff] }
  0x2d   :  { %758 = vmatprep.mubr.bf16.mxu1 %v150_v1  ;;  %1396 = vmatpush3.bf16.msra.mxu0 %v1536_v6  ;;  %v107_v1 = vld [vmem:[%s2465_s0 + $0x2b0] sm:$0xff]  ;;  %v48_v50 = vld [vmem:[%s2465_s0 + $0xd8] sm:$0xff] }
  0x2e   :  { %1492 = vmatpush3.bf16.msra.mxu1 %v1536_v6  ;;  %1397 = vmatprep.subr.bf16.mxu0 %v1537_v15  ;;  %v129_v6 = vld [vmem:[%s2465_s0 + $0x360] sm:$0xff]  ;;  %v177_v8 = vpack.c.bf16 %v114_v2, %v107_v1  ;;  %v83_v1 = vld [vmem:[%s2465_s0 + $0x1f0] sm:$0xff]  ;;  %v90_v2 = vld [vmem:[%s2465_s0 + $0x228] sm:$0xff] }
  0x2f   :  { %1485 = vmatprep.subr.bf16.mxu1 %v1537_v15  ;;  %v185_v10 = vpack.c.bf16 %v129_v6, %v122_v5  ;;  %v26_v15 = vld [vmem:[%s2465_s0 + $0x28] sm:$0xff]  ;;  %v166_v5 = vpack.c.bf16 %v89_v0, %v82_v63  ;;  %v167_v6 = vpack.c.bf16 %v90_v2, %v83_v1 }
  0x31   :  { %1398 = vmatpush3.bf16.msra.mxu0 %v1538_v17 }
  0x32   :  { %1493 = vmatpush3.bf16.msra.mxu1 %v1538_v17  ;;  %1399 = vmatprep.subr.bf16.mxu0 %v1539_v24  ;;  %v110_v17 = vld [vmem:[%s2465_s0 + $0x2c8] sm:$0xff] }
  0x33   :  { %662 = vmatmul.mubr.bf16.gmra.mrb[8].mxu0 %v147_v12  ;;  %1486 = vmatprep.subr.bf16.mxu1 %v1539_v24  ;;  %v126_v12 = vld [vmem:[%s2465_s0 + $0x348] sm:$0xff]  ;;  %v180_v22 = vpack.c.bf16 %v117_v18, %v110_v17  ;;  %v32_v24 = vld [vmem:[%s2465_s0 + $0x58] sm:$0xff] }
  0x34   :  { %759 = vmatmul.mubr.bf16.gmra.mrb[8].mxu1 %v149_v13  ;;  %669 = vmatprep.mubr.bf16.mxu0 %v155_v14  ;;  %v121_v13 = vld [vmem:[%s2465_s0 + $0x320] sm:$0xff]  ;;  %v128_v14 = vld [vmem:[%s2465_s0 + $0x358] sm:$0xff]  ;;  %v182_v19 = vpack.c.bf16 %v126_v12, %v119_v11  ;;  %v103_v12 = vld [vmem:[%s2465_s0 + $0x290] sm:$0xff] }
  0x35   :  { %766 = vmatprep.mubr.bf16.mxu1 %v157_v16  ;;  %1400 = vmatpush3.bf16.msra.mxu0 %v1540_v27  ;;  %v33_v16 = vld [vmem:[%s2465_s0 + $0x60] sm:$0xff]  ;;  %v184_v20 = vpack.c.bf16 %v128_v14, %v121_v13  ;;  %v96_v11 = vld [vmem:[%s2465_s0 + $0x258] sm:$0xff]  ;;  %v111_v13 = vld [vmem:[%s2465_s0 + $0x2d0] sm:$0xff] }
  0x36   :  { %1494 = vmatpush3.bf16.msra.mxu1 %v1540_v27  ;;  %1401 = vmatprep.subr.bf16.mxu0 %v1541_v32  ;;  %v138_v21 = vpack.c.bf16 %v33_v16, %v26_v15  ;;  %v40_v27 = vld [vmem:[%s2465_s0 + $0x98] sm:$0xff]  ;;  %v118_v14 = vld [vmem:[%s2465_s0 + $0x308] sm:$0xff]  ;;  %v173_v17 = vpack.c.bf16 %v103_v12, %v96_v11 }
  0x37   :  { %1487 = vmatprep.subr.bf16.mxu1 %v1541_v32  ;;  %v179_v32 = vpack.c.bf16 %v116_v26, %v109_v25  ;;  %v181_v18 = vpack.c.bf16 %v118_v14, %v111_v13 }
  0x39   :  { %1402 = vmatpush3.bf16.msra.mxu0 %v1542_v33 }
  0x3a   :  { %1495 = vmatpush3.bf16.msra.mxu1 %v1542_v33  ;;  %1403 = vmatprep.subr.bf16.mxu0 %v1543_v42 }
  0x3b   :  { %670 = vmatmul.mubr.bf16.gmra.mrb[12].mxu0 %v154_v28  ;;  %1488 = vmatprep.subr.bf16.mxu1 %v1543_v42  ;;  %v47_v28 = vld [vmem:[%s2465_s0 + $0xd0] sm:$0xff]  ;;  %v34_v42 = vld [vmem:[%s2465_s0 + $0x68] sm:$0xff] }
  0x3c   :  { %767 = vmatmul.mubr.bf16.gmra.mrb[12].mxu1 %v156_v29  ;;  %677 = vmatprep.mubr.bf16.mxu0 %v162_v30  ;;  %v124_v29 = vld [vmem:[%s2465_s0 + $0x338] sm:$0xff]  ;;  %v131_v30 = vld [vmem:[%s2465_s0 + $0x370] sm:$0xff]  ;;  %v145_v33 = vpack.c.bf16 %v47_v28, %v40_v27  ;;  %v2110_v27 = vld [vmem:[%s2466_s2] ss:$0 sm:$0xff] }
  0x3d   :  { %774 = vmatprep.mubr.bf16.mxu1 %v164_v31  ;;  %1404 = vmatpush3.bf16.msra.mxu0 %v1544_v44  ;;  %v137_v31 = vpack.c.bf16 %v32_v24, %v25_v23  ;;  %v187_v34 = vpack.c.bf16 %v131_v30, %v124_v29 }
  0x3e   :  { %1496 = vmatpush3.bf16.msra.mxu1 %v1544_v44  ;;  %1405 = vmatprep.subr.bf16.mxu0 %v1545_v49  ;;  %v186_v44 = vpack.c.bf16 %v130_v38, %v123_v37 }
  0x3f   :  { %1489 = vmatprep.subr.bf16.mxu1 %v1545_v49  ;;  %v41_v49 = vld [vmem:[%s2465_s0 + $0xa0] sm:$0xff] }
  0x40   :  { %v146_v56 = vpack.c.bf16 %v48_v50, %v41_v49 }
  0x41   :  { %1406 = vmatpush3.bf16.msra.mxu0 %v1546_v52 }
  0x42   :  { %1497 = vmatpush3.bf16.msra.mxu1 %v1546_v52  ;;  %v75_v52 = vld [vmem:[%s2465_s0 + $0x1b0] sm:$0xff] }
  0x43   :  { %678 = vmatmul.mubr.bf16.gmra.mrb[16].mxu0 %v161_v43  ;;  %1464 = vmatprep.subr.bf16.mxu1 %v1547_v59  ;;  %v144_v43 = vpack.c.bf16 %v46_v36, %v39_v35  ;;  %v159_v57 = vpack.c.bf16 %v75_v52, %v68_v51 }
  0x44   :  { %775 = vmatmul.mubr.bf16.gmra.mrb[16].mxu1 %v163_v45  ;;  %685 = vmatprep.mubr.bf16.mxu0 %v169_v46  ;;  %v152_v45 = vpack.c.bf16 %v61_v40, %v54_v39  ;;  %v139_v46 = vpack.c.bf16 %v34_v42, %v27_v41 }
  0x45   :  { %782 = vmatprep.mubr.bf16.mxu1 %v171_v47  ;;  %v53_v47 = vld [vmem:[%s2465_s0 + $0x100] sm:$0xff] }
  0x46   :  { %v151_v55 = vpack.c.bf16 %v60_v48, %v53_v47 }
  0x4b   :  { %686 = vmatmul.mubr.bf16.gmra.mrb[20].mxu0 %v168_v58  ;;  %v153_v58 = vpack.c.bf16 %v62_v54, %v55_v53 }
  0x4c   :  { %783 = vmatmul.mubr.bf16.gmra.mrb[20].mxu1 %v170_v60  ;;  %693 = vmatprep.mubr.bf16.mxu0 %v176_v61  ;;  %v74_v60 = vld [vmem:[%s2465_s0 + $0x1a8] sm:$0xff]  ;;  %v69_v61 = vld [vmem:[%s2465_s0 + $0x180] sm:$0xff] }
  0x4d   :  { %790 = vmatprep.mubr.bf16.mxu1 %v178_v62  ;;  %v76_v62 = vld [vmem:[%s2465_s0 + $0x1b8] sm:$0xff] }
  0x4e   :  { %v160_v4 = vpack.c.bf16 %v76_v62, %v69_v61 }
  0x53   :  { %694 = vmatmul.mubr.bf16.gmra.mrb[24].mxu0 %v175_v7  ;;  %v81_v7 = vld [vmem:[%s2465_s0 + $0x1e0] sm:$0xff] }
  0x54   :  { %791 = vmatmul.mubr.bf16.gmra.mrb[24].mxu1 %v177_v8  ;;  %701 = vmatprep.mubr.bf16.mxu0 %v183_v9  ;;  %v88_v8 = vld [vmem:[%s2465_s0 + $0x218] sm:$0xff]  ;;  %v97_v9 = vld [vmem:[%s2465_s0 + $0x260] sm:$0xff] }
  0x55   :  { %798 = vmatprep.mubr.bf16.mxu1 %v185_v10  ;;  %v104_v10 = vld [vmem:[%s2465_s0 + $0x298] sm:$0xff]  ;;  %v165_v15 = vpack.c.bf16 %v88_v8, %v81_v7 }
  0x56   :  { %v174_v16 = vpack.c.bf16 %v104_v10, %v97_v9 }
  0x5b   :  { %702 = vmatmul.mubr.bf16.gmra.mrb[28].mxu0 %v182_v19  ;;  %v95_v19 = vld [vmem:[%s2465_s0 + $0x250] sm:$0xff] }
  0x5c   :  { %799 = vmatmul.mubr.bf16.gmra.mrb[28].mxu1 %v184_v20  ;;  %839 = vmatprep.mubr.bf16.mxu0 %v138_v21  ;;  %v102_v20 = vld [vmem:[%s2465_s0 + $0x288] sm:$0xff]  ;;  %v125_v21 = vld [vmem:[%s2465_s0 + $0x340] sm:$0xff] }
  0x5d   :  { %887 = vmatprep.mubr.bf16.mxu1 %v180_v22  ;;  %v132_v22 = vld [vmem:[%s2465_s0 + $0x378] sm:$0xff]  ;;  %v172_v23 = vpack.c.bf16 %v102_v20, %v95_v19 }
  0x5e   :  { %v188_v24 = vpack.c.bf16 %v132_v22, %v125_v21 }
  0x63   :  { %840 = vmatmul.mubr.bf16.vlgmr.msra.gmra.mrb[32].mxu0 %v137_v31 }
  0x64   :  { %888 = vmatmul.mubr.bf16.vlgmr.msra.gmra.mrb[32].mxu1 %v179_v32  ;;  %847 = vmatprep.mubr.bf16.mxu0 %v145_v33 }
  0x65   :  { %1465 = vmatpush3.bf16.msra.mxu1 %v1547_v59  ;;  %895 = vmatprep.mubr.bf16.mxu1 %v187_v34  ;;  %v67_v59 = vld [vmem:[%s2465_s0 + $0x170] sm:$0xff] }
  0x66   :  { %v158_v3 = vpack.c.bf16 %v74_v60, %v67_v59 }
  0x6b   :  { %848 = vmatmul.mubr.bf16.gmra.mrb[36].mxu0 %v144_v43 }
  0x6c   :  { %896 = vmatmul.mubr.bf16.gmra.mrb[36].mxu1 %v186_v44  ;;  %855 = vmatprep.mubr.bf16.mxu0 %v152_v45 }
  0x6d   :  { %1466 = vmatprep.mubr.msk.bf16.mxu1 %vm588_vm0, %v139_v46 }
  0x73   :  { %856 = vmatmul.mubr.bf16.gmra.mrb[40].mxu0 %v151_v55 }
  0x74   :  { %1467 = vmatmul.mubr.msk.bf16.vlgmr.msra.gmra.mrb[40].mxu1 %vm588_vm0, %v146_v56  ;;  %863 = vmatprep.mubr.bf16.mxu0 %v159_v57 }
  0x75   :  { %1470 = vmatprep.mubr.msk.bf16.mxu1 %vm588_vm0, %v153_v58 }
  0x7b   :  { %864 = vmatmul.mubr.bf16.gmra.mrb[44].mxu0 %v158_v3 }
  0x7c   :  { %1471 = vmatmul.mubr.msk.bf16.gmra.mrb[44].mxu1 %vm588_vm0, %v160_v4  ;;  %871 = vmatprep.mubr.bf16.mxu0 %v166_v5 }
  0x7d   :  { %1474 = vmatprep.mubr.msk.bf16.mxu1 %vm588_vm0, %v167_v6 }
  0x83   :  { %872 = vmatmul.mubr.bf16.gmra.mrb[48].mxu0 %v165_v15 }
  0x84   :  { %1475 = vmatmul.mubr.msk.bf16.gmra.mrb[48].mxu1 %vm588_vm0, %v174_v16  ;;  %879 = vmatprep.mubr.bf16.mxu0 %v173_v17 }
  0x85   :  { %1478 = vmatprep.mubr.msk.bf16.mxu1 %vm588_vm0, %v181_v18 }
  0x8b   :  { %880 = vmatmul.mubr.bf16.gmra.mrb[52].mxu0 %v172_v23 }
  0x8c   :  { %1479 = vmatmul.mubr.msk.bf16.gmra.mrb[52].mxu1 %vm588_vm0, %v188_v24 }
  0xf6   :  { %v1279_v25 = vpop.f32.mrb[0].mxu0 }
  0xf7   :  { %v1343_v26 = vpop.f32.mrb[0].mxu1  ;;  %v1280_v28 = vpop.f32.mrb[1].mxu0 }
  0xf8   :  { %v1281_v29 = vadd.f32 %v1280_v28, %v1279_v25  ;;  %v1344_v30 = vpop.f32.mrb[1].mxu1  ;;  %v1282_v31 = vpop.f32.mrb[2].mxu0 }
  0xf9   :  { %v1345_v32 = vadd.f32 %v1344_v30, %v1343_v26  ;;  %v1346_v33 = vpop.f32.mrb[2].mxu1  ;;  %v1283_v34 = vpop.f32.mrb[3].mxu0 }
  0xfa   :  { %v648_v35 = vadd.f32 %v1281_v29, %v2110_v27  ;;  %v1284_v36 = vadd.f32 %v1283_v34, %v1282_v31  ;;  %v1347_v37 = vpop.f32.mrb[3].mxu1 }
  0xfb   :  { %v1348_v38 = vadd.f32 %v1347_v37, %v1346_v33 }
  0xfc   :  { %v2113_v39 = vadd.f32 %v1345_v32, %v648_v35  ;;  %v651_v40 = vadd.f32 %v1284_v36, %v2110_v27 }
  0xfe   :  { %v2116_v41 = vadd.f32 %v1348_v38, %v651_v40  ;;  %v1285_v42 = vpop.f32.mrb[4].mxu0 }
  0xff   :  { %v1349_v43 = vpop.f32.mrb[4].mxu1  ;;  %v1286_v44 = vpop.f32.mrb[5].mxu0 }
 0x100   :  { %v1287_v45 = vadd.f32 %v1286_v44, %v1285_v42  ;;  %v1350_v46 = vpop.f32.mrb[5].mxu1  ;;  %v1288_v47 = vpop.f32.mrb[6].mxu0 }
 0x101   :  { %v1351_v48 = vadd.f32 %v1350_v46, %v1349_v43  ;;  %v1352_v49 = vpop.f32.mrb[6].mxu1  ;;  %v1289_v50 = vpop.f32.mrb[7].mxu0 }
 0x102   :  { %v656_v51 = vadd.f32 %v1287_v45, %v2110_v27  ;;  %v1290_v52 = vadd.f32 %v1289_v50, %v1288_v47  ;;  %v1353_v53 = vpop.f32.mrb[7].mxu1 }
 0x103   :  { %v1354_v54 = vadd.f32 %v1353_v53, %v1352_v49 }
 0x104   :  { %v2119_v55 = vadd.f32 %v1351_v48, %v656_v51  ;;  %v659_v56 = vadd.f32 %v1290_v52, %v2110_v27 }
 0x106   :  { %v2122_v57 = vadd.f32 %v1354_v54, %v659_v56  ;;  %v1291_v58 = vpop.f32.mrb[8].mxu0 }
 0x107   :  { %v1355_v59 = vpop.f32.mrb[8].mxu1  ;;  %v1292_v60 = vpop.f32.mrb[9].mxu0 }
 0x108   :  { %v1293_v61 = vadd.f32 %v1292_v60, %v1291_v58  ;;  %v1356_v62 = vpop.f32.mrb[9].mxu1  ;;  %v1294_v63 = vpop.f32.mrb[10].mxu0 }
 0x109   :  { %v1357_v0 = vadd.f32 %v1356_v62, %v1355_v59  ;;  %v1358_v1 = vpop.f32.mrb[10].mxu1  ;;  %v1295_v2 = vpop.f32.mrb[11].mxu0 }
 0x10a   :  { %v664_v3 = vadd.f32 %v1293_v61, %v2110_v27  ;;  %v1296_v4 = vadd.f32 %v1295_v2, %v1294_v63  ;;  %v1359_v5 = vpop.f32.mrb[11].mxu1 }
 0x10b   :  { %v1360_v6 = vadd.f32 %v1359_v5, %v1358_v1 }
 0x10c   :  { %v2125_v7 = vadd.f32 %v1357_v0, %v664_v3  ;;  %v667_v8 = vadd.f32 %v1296_v4, %v2110_v27 }
 0x10e   :  { %v2128_v9 = vadd.f32 %v1360_v6, %v667_v8  ;;  %v1297_v10 = vpop.f32.mrb[12].mxu0 }
 0x10f   :  { %v1361_v11 = vpop.f32.mrb[12].mxu1  ;;  %v1298_v12 = vpop.f32.mrb[13].mxu0 }
 0x110   :  { %v1299_v13 = vadd.f32 %v1298_v12, %v1297_v10  ;;  %v1362_v14 = vpop.f32.mrb[13].mxu1  ;;  %v1300_v15 = vpop.f32.mrb[14].mxu0 }
 0x111   :  { %v1363_v16 = vadd.f32 %v1362_v14, %v1361_v11  ;;  %v1364_v17 = vpop.f32.mrb[14].mxu1  ;;  %v1301_v18 = vpop.f32.mrb[15].mxu0 }
 0x112   :  { %v672_v19 = vadd.f32 %v1299_v13, %v2110_v27  ;;  %v1302_v20 = vadd.f32 %v1301_v18, %v1300_v15  ;;  %v1365_v21 = vpop.f32.mrb[15].mxu1 }
 0x113   :  { %v1366_v22 = vadd.f32 %v1365_v21, %v1364_v17 }
 0x114   :  { %v2131_v23 = vadd.f32 %v1363_v16, %v672_v19  ;;  %v675_v24 = vadd.f32 %v1302_v20, %v2110_v27 }
 0x116   :  { %v2134_v25 = vadd.f32 %v1366_v22, %v675_v24  ;;  %v1303_v26 = vpop.f32.mrb[16].mxu0 }
 0x117   :  { %v1367_v28 = vpop.f32.mrb[16].mxu1  ;;  %v1304_v29 = vpop.f32.mrb[17].mxu0 }
 0x118   :  { %v1305_v30 = vadd.f32 %v1304_v29, %v1303_v26  ;;  %v1368_v31 = vpop.f32.mrb[17].mxu1  ;;  %v1306_v32 = vpop.f32.mrb[18].mxu0 }
 0x119   :  { %v1369_v33 = vadd.f32 %v1368_v31, %v1367_v28  ;;  %v1370_v34 = vpop.f32.mrb[18].mxu1  ;;  %v1307_v35 = vpop.f32.mrb[19].mxu0 }
 0x11a   :  { %v680_v36 = vadd.f32 %v1305_v30, %v2110_v27  ;;  %v1308_v37 = vadd.f32 %v1307_v35, %v1306_v32  ;;  %v1371_v38 = vpop.f32.mrb[19].mxu1 }
 0x11b   :  { %v1372_v40 = vadd.f32 %v1371_v38, %v1370_v34 }
 0x11c   :  { %v2137_v42 = vadd.f32 %v1369_v33, %v680_v36  ;;  %v683_v43 = vadd.f32 %v1308_v37, %v2110_v27 }
 0x11e   :  { %v2140_v44 = vadd.f32 %v1372_v40, %v683_v43  ;;  %v1309_v45 = vpop.f32.mrb[20].mxu0 }
 0x11f   :  { %v1373_v46 = vpop.f32.mrb[20].mxu1  ;;  %v1310_v47 = vpop.f32.mrb[21].mxu0 }
 0x120   :  { %v1311_v48 = vadd.f32 %v1310_v47, %v1309_v45  ;;  %v1374_v49 = vpop.f32.mrb[21].mxu1  ;;  %v1312_v50 = vpop.f32.mrb[22].mxu0 }
 0x121   :  { %v1375_v51 = vadd.f32 %v1374_v49, %v1373_v46  ;;  %v1376_v52 = vpop.f32.mrb[22].mxu1  ;;  %v1313_v53 = vpop.f32.mrb[23].mxu0 }
 0x122   :  { %v688_v54 = vadd.f32 %v1311_v48, %v2110_v27  ;;  %v1314_v56 = vadd.f32 %v1313_v53, %v1312_v50  ;;  %v1377_v58 = vpop.f32.mrb[23].mxu1 }
 0x123   :  { %v1378_v59 = vadd.f32 %v1377_v58, %v1376_v52 }
 0x124   :  { %v2143_v60 = vadd.f32 %v1375_v51, %v688_v54  ;;  %v691_v61 = vadd.f32 %v1314_v56, %v2110_v27 }
 0x126   :  { %v2146_v62 = vadd.f32 %v1378_v59, %v691_v61  ;;  %v1315_v63 = vpop.f32.mrb[24].mxu0 }
 0x127   :  { %v1379_v0 = vpop.f32.mrb[24].mxu1  ;;  %v1316_v1 = vpop.f32.mrb[25].mxu0 }
 0x128   :  { %v1317_v2 = vadd.f32 %v1316_v1, %v1315_v63  ;;  %v1380_v3 = vpop.f32.mrb[25].mxu1  ;;  %v1318_v4 = vpop.f32.mrb[26].mxu0 }
 0x129   :  { %v1381_v5 = vadd.f32 %v1380_v3, %v1379_v0  ;;  %v1382_v6 = vpop.f32.mrb[26].mxu1  ;;  %v1319_v8 = vpop.f32.mrb[27].mxu0 }
 0x12a   :  { %v696_v10 = vadd.f32 %v1317_v2, %v2110_v27  ;;  %v1320_v11 = vadd.f32 %v1319_v8, %v1318_v4  ;;  %v1383_v12 = vpop.f32.mrb[27].mxu1 }
 0x12b   :  { %v1384_v13 = vadd.f32 %v1383_v12, %v1382_v6 }
 0x12c   :  { %v793_v14 = vadd.f32 %v1381_v5, %v696_v10  ;;  %v699_v15 = vadd.f32 %v1320_v11, %v2110_v27 }
 0x12e   :  { %v796_v16 = vadd.f32 %v1384_v13, %v699_v15  ;;  %v1321_v17 = vpop.f32.mrb[28].mxu0 }
 0x12f   :  { %v1385_v18 = vpop.f32.mrb[28].mxu1  ;;  %v1322_v19 = vpop.f32.mrb[29].mxu0 }
 0x130   :  { %v1323_v20 = vadd.f32 %v1322_v19, %v1321_v17  ;;  %v1386_v21 = vpop.f32.mrb[29].mxu1  ;;  %v1324_v22 = vpop.f32.mrb[30].mxu0 }
 0x131   :  { %v1387_v24 = vadd.f32 %v1386_v21, %v1385_v18  ;;  %v1388_v26 = vpop.f32.mrb[30].mxu1  ;;  %v1325_v28 = vpop.f32.mrb[31].mxu0 }
 0x132   :  { %v704_v29 = vadd.f32 %v1323_v20, %v2110_v27  ;;  %v1326_v30 = vadd.f32 %v1325_v28, %v1324_v22  ;;  %v1389_v31 = vpop.f32.mrb[31].mxu1 }
 0x133   :  { %v1390_v32 = vadd.f32 %v1389_v31, %v1388_v26 }
 0x134   :  { %v801_v33 = vadd.f32 %v1387_v24, %v704_v29  ;;  %v707_v34 = vadd.f32 %v1326_v30, %v2110_v27 }
 0x136   :  { %v804_v35 = vadd.f32 %v1390_v32, %v707_v34  ;;  %v1407_v36 = vpop.f32.mrb[32].mxu0 }
 0x137   :  { %v1443_v37 = vpop.f32.mrb[32].mxu1  ;;  %v1408_v38 = vpop.f32.mrb[33].mxu0 }
 0x138   :  { %v1409_v40 = vadd.f32 %v1408_v38, %v1407_v36  ;;  %v1444_v43 = vpop.f32.mrb[33].mxu1  ;;  %v1410_v45 = vpop.f32.mrb[34].mxu0 }
 0x139   :  { %v1445_v46 = vadd.f32 %v1444_v43, %v1443_v37  ;;  %v1446_v47 = vpop.f32.mrb[34].mxu1  ;;  %v1411_v48 = vpop.f32.mrb[35].mxu0 }
 0x13a   :  { %v1412_v49 = vadd.f32 %v1411_v48, %v1410_v45  ;;  %v1447_v50 = vpop.f32.mrb[35].mxu1  ;;  %v842_v51 = vadd.f32 %v1409_v40, %v2113_v39 }
 0x13b   :  { %v1448_v52 = vadd.f32 %v1447_v50, %v1446_v47  ;;  %v2153_v53 = vadd.f32 %v1445_v46, %v793_v14 }
 0x13c   :  { %v845_v54 = vadd.f32 %v1412_v49, %v2116_v41 }
 0x13d   :  { %v2156_v27 = vadd.f32 %v1448_v52, %v796_v16 }
 0x13e   :  { %v1413_v56 = vpop.f32.mrb[36].mxu0 }
 0x13f   :  { %v1449_v58 = vpop.f32.mrb[36].mxu1  ;;  %v1414_v59 = vpop.f32.mrb[37].mxu0 }
 0x140   :  { %v1415_v61 = vadd.f32 %v1414_v59, %v1413_v56  ;;  %v1450_v63 = vpop.f32.mrb[37].mxu1  ;;  %v1416_v0 = vpop.f32.mrb[38].mxu0 }
 0x141   :  { %v1451_v1 = vadd.f32 %v1450_v63, %v1449_v58  ;;  %v1452_v2 = vpop.f32.mrb[38].mxu1  ;;  %v1417_v3 = vpop.f32.mrb[39].mxu0 }
 0x142   :  { %v1418_v4 = vadd.f32 %v1417_v3, %v1416_v0  ;;  %v1453_v5 = vpop.f32.mrb[39].mxu1  ;;  %v850_v39 = vadd.f32 %v1415_v61, %v2119_v55 }
 0x143   :  { %v1454_v6 = vadd.f32 %v1453_v5, %v1452_v2  ;;  %v2159_v8 = vadd.f32 %v1451_v1, %v801_v33 }
 0x144   :  { %v853_v41 = vadd.f32 %v1418_v4, %v2122_v57 }
 0x145   :  { %v2162_v10 = vadd.f32 %v1454_v6, %v804_v35 }
 0x146   :  { %v1419_v11 = vpop.f32.mrb[40].mxu0 }
 0x147   :  { %v1468_v12 = vpop.f32.mrb[40].mxu1  ;;  %v1420_v13 = vpop.f32.mrb[41].mxu0 }
 0x148   :  { %v947_v14 = vadd.f32 %v1468_v12, %v850_v39  ;;  %v1421_v15 = vadd.f32 %v1420_v13, %v1419_v11  ;;  %v938_v16 = vpop.f32.mrb[41].mxu1  ;;  %v1422_v17 = vpop.f32.mrb[42].mxu0 }
 0x149   :  { %v939_v18 = vadd.f32 %v938_v16, %v842_v51  ;;  %v1469_v19 = vpop.f32.mrb[42].mxu1  ;;  %v1423_v20 = vpop.f32.mrb[43].mxu0 }
 0x14a   :  { %v2164_v21 = vmax.f32 %v947_v14, 0.0  ;;  %v950_v55 = vadd.f32 %v1469_v19, %v853_v41  ;;  %v1424_v22 = vadd.f32 %v1423_v20, %v1422_v17  ;;  %v941_v24 = vpop.f32.mrb[43].mxu1  ;;  %v858_v26 = vadd.f32 %v1421_v15, %v2125_v7 }
 0x14b   :  { %v2167_v57 = vmax.f32 %v939_v18, 0.0  ;;  %v942_v28 = vadd.f32 %v941_v24, %v845_v54 }
 0x14c   :  { %1147 = vst [vmem:[%s2467_s4 + $0x10] sm:$0xff] %v2164_v21  ;;  %v2173_v29 = vmax.f32 %v950_v55, 0.0  ;;  %1021 = vrot.lane.b32.xlu1 %v2164_v21, %s1580_s28  ;;  %v861_v30 = vadd.f32 %v1424_v22, %v2128_v9 }
 0x14d   :  { %1145 = vst [vmem:[%s2467_s4] sm:$0xff] %v2167_v57  ;;  %v2182_v7 = vmax.f32 %v942_v28, 0.0  ;;  %1017 = vrot.lane.b32.xlu0 %v2167_v57, %s1580_s28 }
 0x14e   :  { %1148 = vst [vmem:[%s2467_s4 + $0x18] sm:$0xff] %v2173_v29  ;;  %v1425_v31 = vpop.f32.mrb[44].mxu0 }
 0x14f   :  { %1146 = vst [vmem:[%s2467_s4 + $0x8] sm:$0xff] %v2182_v7  ;;  %v1472_v9 = vpop.f32.mrb[44].mxu1  ;;  %v1426_v32 = vpop.f32.mrb[45].mxu0 }
 0x150   :  { %v1427_v33 = vadd.f32 %v1426_v32, %v1425_v31  ;;  %v954_v34 = vpop.f32.mrb[45].mxu1  ;;  %1023 = vrot.lane.b32.xlu1 %v2173_v29, %s1580_s28  ;;  %v1428_v35 = vpop.f32.mrb[46].mxu0 }
 0x151   :  { %v955_v36 = vadd.f32 %v954_v34, %v858_v26  ;;  %v1473_v37 = vpop.f32.mrb[46].mxu1  ;;  %1019 = vrot.lane.b32.xlu0 %v2182_v7, %s1580_s28  ;;  %v1429_v38 = vpop.f32.mrb[47].mxu0 }
 0x152   :  { %v866_v40 = vadd.f32 %v1427_v33, %v2131_v23  ;;  %v1430_v43 = vadd.f32 %v1429_v38, %v1428_v35  ;;  %v957_v45 = vpop.f32.mrb[47].mxu1 }
 0x153   :  { %v2199_v46 = vmax.f32 %v955_v36, 0.0  ;;  %v958_v47 = vadd.f32 %v957_v45, %v861_v30 }
 0x154   :  { %v869_v48 = vadd.f32 %v1430_v43, %v2134_v25  ;;  %v963_v49 = vadd.f32 %v1472_v9, %v866_v40 }
 0x155   :  { %1149 = vst [vmem:[%s2467_s4 + $0x20] sm:$0xff] %v2199_v46  ;;  %v2206_v50 = vmax.f32 %v958_v47, 0.0  ;;  %1025 = vrot.lane.b32.xlu0 %v2199_v46, %s1580_s28 }
 0x156   :  { %v1431_v51 = vpop.f32.mrb[48].mxu0  ;;  %v2210_v23 = vmax.f32 %v963_v49, 0.0  ;;  %v966_v52 = vadd.f32 %v1473_v37, %v869_v48 }
 0x157   :  { %1150 = vst [vmem:[%s2467_s4 + $0x28] sm:$0xff] %v2206_v50  ;;  %v1476_v25 = vpop.f32.mrb[48].mxu1  ;;  %1027 = vrot.lane.b32.xlu1 %v2206_v50, %s1580_s28  ;;  %v1432_v54 = vpop.f32.mrb[49].mxu0 }
 0x158   :  { %v1433_v56 = vadd.f32 %v1432_v54, %v1431_v51  ;;  %v970_v58 = vpop.f32.mrb[49].mxu1  ;;  %v1434_v59 = vpop.f32.mrb[50].mxu0  ;;  %1151 = vst [vmem:[%s2467_s4 + $0x30] sm:$0xff] %v2210_v23  ;;  %v2222_v61 = vmax.f32 %v966_v52, 0.0 }
 0x159   :  { %v1477_v63 = vpop.f32.mrb[50].mxu1  ;;  %1029 = vrot.lane.b32.xlu0 %v2210_v23, %s1580_s28  ;;  %v1435_v0 = vpop.f32.mrb[51].mxu0 }
 0x15a   :  { %v874_v1 = vadd.f32 %v1433_v56, %v2137_v42  ;;  %v1436_v2 = vadd.f32 %v1435_v0, %v1434_v59  ;;  %v973_v3 = vpop.f32.mrb[51].mxu1  ;;  %1152 = vst [vmem:[%s2467_s4 + $0x38] sm:$0xff] %v2222_v61  ;;  %v1097_v56 = vld [vmem:[%s2469_s3] sm:$0xff] }
 0x15b   :  { %1031 = vrot.lane.b32.xlu1 %v2222_v61, %s1580_s28 }
 0x15c   :  { %v971_v4 = vadd.f32 %v970_v58, %v874_v1  ;;  %v877_v5 = vadd.f32 %v1436_v2, %v2140_v44 }
 0x15e   :  { %v2234_v39 = vmax.f32 %v971_v4, 0.0  ;;  %v974_v6 = vadd.f32 %v973_v3, %v877_v5  ;;  %v1437_v41 = vpop.f32.mrb[52].mxu0 }
 0x15f   :  { %v1480_v11 = vpop.f32.mrb[52].mxu1  ;;  %v1438_v12 = vpop.f32.mrb[53].mxu0 }
 0x160   :  { %1153 = vst [vmem:[%s2467_s4 + $0x40] sm:$0xff] %v2234_v39  ;;  %v2240_v42 = vmax.f32 %v974_v6, 0.0  ;;  %v995_v13 = vadd.f32 %v1480_v11, %v2159_v8  ;;  %v1439_v14 = vadd.f32 %v1438_v12, %v1437_v41  ;;  %v986_v15 = vpop.f32.mrb[53].mxu1  ;;  %v1440_v16 = vpop.f32.mrb[54].mxu0  ;;  %1033 = vrot.lane.b32.xlu0 %v2234_v39, %s1580_s28  ;;  %v1100_v6 = vld [vmem:[%s2469_s3 + $0x18] sm:$0xff]  ;;  %v1098_v11 = vld [vmem:[%s2469_s3 + $0x8] sm:$0xff] }
 0x161   :  { %v987_v44 = vadd.f32 %v986_v15, %v2153_v53  ;;  %v1481_v17 = vpop.f32.mrb[54].mxu1  ;;  %v1441_v18 = vpop.f32.mrb[55].mxu0 }
 0x162   :  { %1154 = vst [vmem:[%s2467_s4 + $0x48] sm:$0xff] %v2240_v42  ;;  %v2250_v19 = vmax.f32 %v995_v13, 0.0  ;;  %v882_v20 = vadd.f32 %v1439_v14, %v2143_v60  ;;  %v998_v8 = vadd.f32 %v1481_v17, %v2162_v10  ;;  %v1442_v55 = vadd.f32 %v1441_v18, %v1440_v16  ;;  %v989_v22 = vpop.f32.mrb[55].mxu1  ;;  %1035 = vrot.lane.b32.xlu1 %v2240_v42, %s1580_s28  ;;  %v1101_v18 = vld [vmem:[%s2469_s3 + $0x20] sm:$0xff] }
 0x163   :  { %v2256_v24 = vmax.f32 %v987_v44, 0.0  ;;  %v990_v53 = vadd.f32 %v989_v22, %v2156_v27 }
 0x164   :  { %1159 = vst [vmem:[%s2467_s4 + $0x70] sm:$0xff] %v2250_v19  ;;  %v2263_v26 = vmax.f32 %v998_v8, 0.0  ;;  %v885_v60 = vadd.f32 %v1442_v55, %v2146_v62  ;;  %v979_v28 = vadd.f32 %v1476_v25, %v882_v20  ;;  %v1099_v25 = vld [vmem:[%s2469_s3 + $0x10] sm:$0xff] }
 0x165   :  { %1157 = vst [vmem:[%s2467_s4 + $0x60] sm:$0xff] %v2256_v24  ;;  %v2270_v10 = vmax.f32 %v990_v53, 0.0  ;;  %1041 = vrot.lane.b32.xlu0 %v2256_v24, %s1580_s28 }
 0x166   :  { %1160 = vst [vmem:[%s2467_s4 + $0x78] sm:$0xff] %v2263_v26  ;;  %v2278_v27 = vmax.f32 %v979_v28, 0.0  ;;  %v982_v30 = vadd.f32 %v1477_v63, %v885_v60 }
 0x167   :  { %1158 = vst [vmem:[%s2467_s4 + $0x68] sm:$0xff] %v2270_v10  ;;  %1043 = vrot.lane.b32.xlu1 %v2270_v10, %s1580_s28 }
 0x168   :  { %1155 = vst [vmem:[%s2467_s4 + $0x50] sm:$0xff] %v2278_v27  ;;  %v2290_v62 = vmax.f32 %v982_v30, 0.0 }
 0x169   :  { %1037 = vrot.lane.b32.xlu0 %v2278_v27, %s1580_s28 }
 0x16a   :  { %1156 = vst [vmem:[%s2467_s4 + $0x58] sm:$0xff] %v2290_v62 }
 0x16b   :  { %1039 = vrot.lane.b32.xlu1 %v2290_v62, %s1580_s28 }
 0x16d   :  { %1045 = vrot.lane.b32.xlu0 %v2250_v19, %s1580_s28 }
 0x16f   :  { %1047 = vrot.lane.b32.xlu1 %v2263_v26, %s1580_s28 }
 0x1be   :  { %v1022_v31 = vpop.permute.xlu1 %1021 }
 0x1bf   :  { %v1051_v9 = vmul.f32 0.5, %v1022_v31  ;;  %1163 = vst [vmem:[%s2468_s5 + $0x10] sm:$0xff] %v1022_v31  ;;  %v1018_v32 = vpop.permute.xlu0 %1017  ;;  %v1103_v31 = vld [vmem:[%s2469_s3 + $0x30] sm:$0xff] }
 0x1c0   :  { %v1049_v33 = vmul.f32 0.5, %v1018_v32  ;;  %1161 = vst [vmem:[%s2468_s5] sm:$0xff] %v1018_v32 }
 0x1c1   :  { %v1069_v34 = vmul.f32 1.442695, %v1051_v9 }
 0x1c2   :  { %v1065_v35 = vmul.f32 1.442695, %v1049_v33  ;;  %v1024_v36 = vpop.permute.xlu1 %1023 }
 0x1c3   :  { %1548 = vpow2.f32 %v1069_v34  ;;  %v1052_v37 = vmul.f32 0.5, %v1024_v36  ;;  %1164 = vst [vmem:[%s2468_s5 + $0x18] sm:$0xff] %v1024_v36  ;;  %v1020_v38 = vpop.permute.xlu0 %1019  ;;  %v1104_v36 = vld [vmem:[%s2469_s3 + $0x38] sm:$0xff] }
 0x1c4   :  { %1550 = vpow2.f32 %v1065_v35  ;;  %v1050_v40 = vmul.f32 0.5, %v1020_v38  ;;  %1162 = vst [vmem:[%s2468_s5 + $0x8] sm:$0xff] %v1020_v38 }
 0x1c5   :  { %v1071_v43 = vmul.f32 1.442695, %v1052_v37 }
 0x1c6   :  { %v1067_v45 = vmul.f32 1.442695, %v1050_v40 }
 0x1c7   :  { %1552 = vpow2.f32 %v1071_v43  ;;  %v1026_v47 = vpop.permute.xlu0 %1025 }
 0x1c8   :  { %1554 = vpow2.f32 %v1067_v45  ;;  %v1053_v48 = vmul.f32 0.5, %v1026_v47  ;;  %1165 = vst [vmem:[%s2468_s5 + $0x20] sm:$0xff] %v1026_v47 }
 0x1c9   :  { %v1028_v49 = vpop.permute.xlu1 %1027 }
 0x1ca   :  { %v1073_v51 = vmul.f32 1.442695, %v1053_v48  ;;  %v1054_v52 = vmul.f32 0.5, %v1028_v49  ;;  %1166 = vst [vmem:[%s2468_s5 + $0x28] sm:$0xff] %v1028_v49 }
 0x1cb   :  { %v1030_v54 = vpop.permute.xlu0 %1029 }
 0x1cc   :  { %1556 = vpow2.f32 %v1073_v51  ;;  %v1075_v58 = vmul.f32 1.442695, %v1054_v52  ;;  %v1055_v59 = vmul.f32 0.5, %v1030_v54  ;;  %1167 = vst [vmem:[%s2468_s5 + $0x30] sm:$0xff] %v1030_v54 }
 0x1cd   :  { %v1549_v63 = vpop.eup %1548  ;;  %v1032_v0 = vpop.permute.xlu1 %1031 }
 0x1ce   :  { %v1551_v1 = vpop.eup %1550  ;;  %v1115_v2 = vmul.f32 %v1549_v63, %v1099_v25  ;;  %1558 = vpow2.f32 %v1075_v58  ;;  %v1077_v3 = vmul.f32 1.442695, %v1055_v59  ;;  %v1056_v4 = vmul.f32 0.5, %v1032_v0  ;;  %1168 = vst [vmem:[%s2468_s5 + $0x38] sm:$0xff] %v1032_v0 }
 0x1cf   :  { %v1113_v5 = vmul.f32 %v1551_v1, %v1097_v56  ;;  %v1105_v56 = vld [vmem:[%s2469_s3 + $0x40] sm:$0xff] }
 0x1d0   :  { %v1131_v41 = vadd.f32 %v1115_v2, %v2164_v21  ;;  %1560 = vpow2.f32 %v1077_v3  ;;  %v1079_v12 = vmul.f32 1.442695, %v1056_v4 }
 0x1d1   :  { %v1553_v13 = vpop.eup %1552  ;;  %v1129_v14 = vadd.f32 %v1113_v5, %v2167_v57 }
 0x1d2   :  { %v1555_v15 = vpop.eup %1554  ;;  %1179 = vst [vmem:[%s2470_s6 + $0x10] sm:$0xff] %v1131_v41  ;;  %v1116_v16 = vmul.f32 %v1553_v13, %v1100_v6  ;;  %1562 = vpow2.f32 %v1079_v12  ;;  %v1034_v44 = vpop.permute.xlu0 %1033  ;;  %v1109_v41 = vld [vmem:[%s2469_s3 + $0x60] sm:$0xff] }
 0x1d3   :  { %1177 = vst [vmem:[%s2470_s6] sm:$0xff] %v1129_v14  ;;  %v1114_v21 = vmul.f32 %v1555_v15, %v1098_v11  ;;  %v1057_v17 = vmul.f32 0.5, %v1034_v44  ;;  %1169 = vst [vmem:[%s2468_s5 + $0x40] sm:$0xff] %v1034_v44  ;;  %v1110_v14 = vld [vmem:[%s2469_s3 + $0x68] sm:$0xff] }
 0x1d4   :  { %v1132_v57 = vadd.f32 %v1116_v16, %v2173_v29  ;;  %v1036_v20 = vpop.permute.xlu1 %1035  ;;  %v1102_v29 = vld [vmem:[%s2469_s3 + $0x28] sm:$0xff]  ;;  %v1107_v16 = vld [vmem:[%s2469_s3 + $0x50] sm:$0xff] }
 0x1d5   :  { %v1130_v8 = vadd.f32 %v1114_v21, %v2182_v7  ;;  %v1081_v55 = vmul.f32 1.442695, %v1057_v17  ;;  %v1058_v22 = vmul.f32 0.5, %v1036_v20  ;;  %1170 = vst [vmem:[%s2468_s5 + $0x48] sm:$0xff] %v1036_v20 }
 0x1d6   :  { %v1557_v53 = vpop.eup %1556  ;;  %1180 = vst [vmem:[%s2470_s6 + $0x18] sm:$0xff] %v1132_v57 }
 0x1d7   :  { %1178 = vst [vmem:[%s2470_s6 + $0x8] sm:$0xff] %v1130_v8  ;;  %v1117_v7 = vmul.f32 %v1557_v53, %v1101_v18  ;;  %1564 = vpow2.f32 %v1081_v55  ;;  %v1083_v60 = vmul.f32 1.442695, %v1058_v22  ;;  %v1042_v28 = vpop.permute.xlu0 %1041  ;;  %v1111_v8 = vld [vmem:[%s2469_s3 + $0x70] sm:$0xff]  ;;  %v1112_v53 = vld [vmem:[%s2469_s3 + $0x78] sm:$0xff] }
 0x1d8   :  { %v1559_v30 = vpop.eup %1558  ;;  %v1061_v9 = vmul.f32 0.5, %v1042_v28  ;;  %1173 = vst [vmem:[%s2468_s5 + $0x60] sm:$0xff] %v1042_v28 }
 0x1d9   :  { %v1133_v32 = vadd.f32 %v1117_v7, %v2199_v46  ;;  %v1118_v33 = vmul.f32 %v1559_v30, %v1102_v29  ;;  %1566 = vpow2.f32 %v1083_v60  ;;  %v1044_v34 = vpop.permute.xlu1 %1043 }
 0x1da   :  { %v1561_v35 = vpop.eup %1560  ;;  %v1089_v37 = vmul.f32 1.442695, %v1061_v9  ;;  %v1062_v38 = vmul.f32 0.5, %v1044_v34  ;;  %1174 = vst [vmem:[%s2468_s5 + $0x68] sm:$0xff] %v1044_v34 }
 0x1db   :  { %1181 = vst [vmem:[%s2470_s6 + $0x20] sm:$0xff] %v1133_v32  ;;  %v1134_v46 = vadd.f32 %v1118_v33, %v2206_v50  ;;  %v1119_v40 = vmul.f32 %v1561_v35, %v1103_v31  ;;  %v1038_v43 = vpop.permute.xlu0 %1037 }
 0x1dc   :  { %v1563_v45 = vpop.eup %1562  ;;  %1568 = vpow2.f32 %v1089_v37  ;;  %v1091_v47 = vmul.f32 1.442695, %v1062_v38  ;;  %v1059_v48 = vmul.f32 0.5, %v1038_v43  ;;  %1171 = vst [vmem:[%s2468_s5 + $0x50] sm:$0xff] %v1038_v43 }
 0x1dd   :  { %1182 = vst [vmem:[%s2470_s6 + $0x28] sm:$0xff] %v1134_v46  ;;  %v1135_v49 = vadd.f32 %v1119_v40, %v2210_v23  ;;  %v1120_v51 = vmul.f32 %v1563_v45, %v1104_v36  ;;  %v1040_v52 = vpop.permute.xlu1 %1039 }
 0x1de   :  { %1570 = vpow2.f32 %v1091_v47  ;;  %v1085_v50 = vmul.f32 1.442695, %v1059_v48  ;;  %v1060_v25 = vmul.f32 0.5, %v1040_v52  ;;  %1172 = vst [vmem:[%s2468_s5 + $0x58] sm:$0xff] %v1040_v52 }
 0x1df   :  { %1183 = vst [vmem:[%s2470_s6 + $0x30] sm:$0xff] %v1135_v49  ;;  %v1136_v54 = vadd.f32 %v1120_v51, %v2222_v61  ;;  %v1046_v23 = vpop.permute.xlu0 %1045  ;;  %v1106_v61 = vld [vmem:[%s2469_s3 + $0x48] sm:$0xff] }
 0x1e0   :  { %1572 = vpow2.f32 %v1085_v50  ;;  %v1087_v58 = vmul.f32 1.442695, %v1060_v25  ;;  %v1063_v59 = vmul.f32 0.5, %v1046_v23  ;;  %1175 = vst [vmem:[%s2468_s5 + $0x70] sm:$0xff] %v1046_v23 }
 0x1e1   :  { %v1565_v63 = vpop.eup %1564  ;;  %1184 = vst [vmem:[%s2470_s6 + $0x38] sm:$0xff] %v1136_v54  ;;  %v1048_v0 = vpop.permute.xlu1 %1047 }
 0x1e2   :  { %v1121_v1 = vmul.f32 %v1565_v63, %v1105_v56  ;;  %1574 = vpow2.f32 %v1087_v58  ;;  %v1093_v2 = vmul.f32 1.442695, %v1063_v59  ;;  %v1064_v3 = vmul.f32 0.5, %v1048_v0  ;;  %1176 = vst [vmem:[%s2468_s5 + $0x78] sm:$0xff] %v1048_v0 }
 0x1e3   :  { %v1567_v4 = vpop.eup %1566 }
 0x1e4   :  { %v1137_v5 = vadd.f32 %v1121_v1, %v2234_v39  ;;  %v1122_v6 = vmul.f32 %v1567_v4, %v1106_v61  ;;  %1576 = vpow2.f32 %v1093_v2  ;;  %v1095_v11 = vmul.f32 1.442695, %v1064_v3 }
 0x1e6   :  { %v1569_v12 = vpop.eup %1568  ;;  %1185 = vst [vmem:[%s2470_s6 + $0x40] sm:$0xff] %v1137_v5  ;;  %v1138_v13 = vadd.f32 %v1122_v6, %v2240_v42  ;;  %1578 = vpow2.f32 %v1095_v11  ;;  %v1108_v42 = vld [vmem:[%s2469_s3 + $0x58] sm:$0xff] }
 0x1e7   :  { %v1125_v39 = vmul.f32 %v1569_v12, %v1109_v41 }
 0x1e8   :  { %v1571_v15 = vpop.eup %1570  ;;  %1186 = vst [vmem:[%s2470_s6 + $0x48] sm:$0xff] %v1138_v13 }
 0x1e9   :  { %v1141_v44 = vadd.f32 %v1125_v39, %v2256_v24  ;;  %v1126_v21 = vmul.f32 %v1571_v15, %v1110_v14 }
 0x1ea   :  { %v1573_v17 = vpop.eup %1572 }
 0x1eb   :  { %1189 = vst [vmem:[%s2470_s6 + $0x60] sm:$0xff] %v1141_v44  ;;  %v1142_v57 = vadd.f32 %v1126_v21, %v2270_v10  ;;  %v1123_v18 = vmul.f32 %v1573_v17, %v1107_v16 }
 0x1ec   :  { %v1575_v20 = vpop.eup %1574 }
 0x1ed   :  { %1190 = vst [vmem:[%s2470_s6 + $0x68] sm:$0xff] %v1142_v57  ;;  %v1139_v24 = vadd.f32 %v1123_v18, %v2278_v27  ;;  %v1124_v55 = vmul.f32 %v1575_v20, %v1108_v42 }
 0x1ee   :  { %v1577_v22 = vpop.eup %1576 }
 0x1ef   :  { %1187 = vst [vmem:[%s2470_s6 + $0x50] sm:$0xff] %v1139_v24  ;;  %v1140_v10 = vadd.f32 %v1124_v55, %v2290_v62  ;;  %v1127_v29 = vmul.f32 %v1577_v22, %v1111_v8 }
 0x1f0   :  { %v1579_v7 = vpop.eup %1578 }
 0x1f1   :  { %1188 = vst [vmem:[%s2470_s6 + $0x58] sm:$0xff] %v1140_v10  ;;  %v1143_v27 = vadd.f32 %v1127_v29, %v2250_v19  ;;  %v1128_v60 = vmul.f32 %v1579_v7, %v1112_v53 }
 0x1f3   :  { %1191 = vst [vmem:[%s2470_s6 + $0x70] sm:$0xff] %v1143_v27  ;;  %v1144_v28 = vadd.f32 %v1128_v60, %v2263_v26 }
 0x1f5   :  { %1192 = vst [vmem:[%s2470_s6 + $0x78] sm:$0xff] %v1144_v28 }

</bundles_post_ra>
